<compile_context>
chip_gen: v6e
topology: v6e:2x2x1
jax: 0.10.0
libtpu: 0.0.40
codegen_flags: <defaults>
</compile_context>

<pallas_src>
import functools
import math

import jax
import jax.numpy as jnp
from jax import lax
from jax.experimental import pallas as pl
from jax.experimental.pallas import tpu as pltpu


def _ghost_kernel(x_ref, w1_ref, b1_ref, wdw_ref, b2_ref, out_ref, *, W,
                  dw_size):
    # x_ref   : (1, Cin, L)     one batch element, C-major, L = H*W on lanes
    # w1_ref  : (Cinit, Cin)    1x1 primary conv weight, BN1 scale pre-folded
    # b1_ref  : (Cinit, 1)      folded BN1 bias
    # wdw_ref : (Cnew, K*K)     depthwise weights (BN2 scale pre-folded),
    #                           column index = ky*K + kx
    # b2_ref  : (Cnew, 1)       folded BN2 bias
    # out_ref : (1, Cinit+Cnew, L)
    Cin = x_ref.shape[1]
    L = x_ref.shape[2]
    Cinit = w1_ref.shape[0]
    Cnew = wdw_ref.shape[0]
    pad = dw_size // 2
    f32 = jnp.float32

    x = x_ref[0].astype(f32)              # (Cin, L)
    w1 = w1_ref[...].astype(f32)          # (Cinit, Cin)
    b1 = b1_ref[...].astype(f32)          # (Cinit, 1)
    wd = wdw_ref[...].astype(f32)         # (Cnew, K*K)  -- loaded once
    b2 = b2_ref[...].astype(f32)          # (Cnew, 1)

    # ---- primary conv: 1x1 conv over channels (BN scale already folded) ----
    if Cin <= 8:
        # Tiny contraction: unrolled VPU broadcast-MACs instead of MXU.
        y1 = jnp.zeros((Cinit, L), f32)
        for ci in range(Cin):
            y1 = y1 + w1[:, ci:ci + 1] * x[ci:ci + 1, :]
    else:
        # Lane-dense MXU matmul: M=Cinit, K=Cin, N=H*W.
        y1 = jnp.dot(w1, x, preferred_element_type=f32)
    x1 = jnp.maximum(y1 + b1, 0.0)        # BN bias + ReLU, (Cinit, L)

    # ---- cheap operation: depthwise KxK conv, pad=K//2, stride=1 ----
    def shift_flat(v, s):
        # y[:, p] = v[:, p + s] if 0 <= p + s < L else 0   (zero fill)
        if s == 0:
            return v
        z = jnp.zeros((v.shape[0], abs(s)), v.dtype)
        if s > 0:
            return jnp.concatenate([v[:, s:], z], axis=1)
        return jnp.concatenate([z, v[:, :s]], axis=1)

    # Horizontally shifted, column-masked copies (one per kx tap).  The mask
    # kills the horizontal wrap of a flat shift at row boundaries; it is
    # applied once per dx (2 selects total for K=3) instead of once per tap.
    col = lax.broadcasted_iota(jnp.int32, (1, L), 1) % W
    xh = {}
    for dx in range(-pad, pad + 1):
        t = shift_flat(x1, dx)
        if dx != 0:
            ok = jnp.logical_and(col + dx >= 0, col + dx < W)
            t = jnp.where(ok, t, 0.0)
        xh[dx] = t

    # Vertical shifts (multiples of W) are pure zero-filled lane shifts -- no
    # extra masking needed -- followed by per-channel broadcast MACs.
    acc = jnp.zeros((Cnew, L), f32)
    for dy in range(-pad, pad + 1):
        for dx in range(-pad, pad + 1):
            t = (dy + pad) * dw_size + (dx + pad)
            tap = shift_flat(xh[dx], dy * W)
            acc = acc + tap * wd[:, t:t + 1]          # per-channel weight
    x2 = jnp.maximum(acc + b2, 0.0)       # BN bias + ReLU, (Cnew, L)

    # ---- concat along channels ----
    if Cinit % 8 == 0:
        # Both halves are sublane-aligned: two full-lane-width aligned stores.
        out_ref[0, :Cinit, :] = x1.astype(out_ref.dtype)
        out_ref[0, Cinit:, :] = x2.astype(out_ref.dtype)
    else:
        # In-register concat, then one aligned (Cfull, L) store instead of two
        # sublane-masked partial stores.
        out_ref[0, :, :] = jnp.concatenate([x1, x2],
                                           axis=0).astype(out_ref.dtype)


def ghost_module_pallas(x_nchw, params, oup):
    """x_nchw: (N, Cin, H, W). Returns (N, oup, H, W). No layout transposes."""
    w1, b1, wdw, b2 = params
    N, Cin, H, W = x_nchw.shape
    Cinit = w1.shape[0]
    Cnew = wdw.shape[0]
    dw_size = int(round(math.sqrt(wdw.shape[1])))
    assert dw_size * dw_size == wdw.shape[1] and dw_size % 2 == 1
    # TODO(synk): ratio > 2 (depthwise channel multiplier > 1) not implemented.
    assert Cnew == Cinit, "only ratio=2 (depthwise multiplier 1) supported"
    Cfull = Cinit + Cnew
    L = H * W

    x_flat = x_nchw.reshape(N, Cin, L)     # free reshape of contiguous NCHW

    kernel = functools.partial(_ghost_kernel, W=W, dw_size=dw_size)
    out_flat = pl.pallas_call(
        kernel,
        out_shape=jax.ShapeDtypeStruct((N, Cfull, L), x_nchw.dtype),
        grid_spec=pltpu.PrefetchScalarGridSpec(
            num_scalar_prefetch=0,
            grid=(N,),
            in_specs=[
                pl.BlockSpec((1, Cin, L), lambda n: (n, 0, 0)),
                pl.BlockSpec((Cinit, Cin), lambda n: (0, 0)),
                pl.BlockSpec((Cinit, 1), lambda n: (0, 0)),
                pl.BlockSpec((Cnew, dw_size * dw_size), lambda n: (0, 0)),
                pl.BlockSpec((Cnew, 1), lambda n: (0, 0)),
            ],
            out_specs=pl.BlockSpec((1, Cfull, L), lambda n: (n, 0, 0)),
        ),
        compiler_params=pltpu.CompilerParams(
            dimension_semantics=("parallel",),
            vmem_limit_bytes=32 * 1024 * 1024),
    )(x_flat, w1, b1, wdw, b2)

    out = out_flat.reshape(N, Cfull, H, W)   # free reshape
    return out[:, :oup]


def _fold_bn(gamma, beta, mean, var, eps=1e-5):
    scale = gamma / jnp.sqrt(var + eps)
    bias = beta - mean * scale
    return scale, bias


def make_params(key, inp, oup, ratio=2, dw_size=3, eps=1e-5):
    """Deterministic synthetic parameters (PyTorch-shaped, then folded)."""
    init_channels = math.ceil(oup / ratio)
    new_channels = init_channels * (ratio - 1)
    ks = jax.random.split(key, 10)

    w1_pt = 0.5 * jax.random.normal(ks[0], (init_channels, inp, 1, 1),
                                    jnp.float32)                   # OIHW
    dw_pt = 0.5 * jax.random.normal(ks[1], (new_channels, 1, dw_size, dw_size),
                                    jnp.float32)                   # OIHW

    gamma1 = jax.random.uniform(ks[2], (init_channels,), jnp.float32, 0.5, 1.5)
    beta1 = 0.1 * jax.random.normal(ks[3], (init_channels,), jnp.float32)
    mean1 = 0.1 * jax.random.normal(ks[4], (init_channels,), jnp.float32)
    var1 = jax.random.uniform(ks[5], (init_channels,), jnp.float32, 0.5, 1.5)

    gamma2 = jax.random.uniform(ks[6], (new_channels,), jnp.float32, 0.5, 1.5)
    beta2 = 0.1 * jax.random.normal(ks[7], (new_channels,), jnp.float32)
    mean2 = 0.1 * jax.random.normal(ks[8], (new_channels,), jnp.float32)
    var2 = jax.random.uniform(ks[9], (new_channels,), jnp.float32, 0.5, 1.5)

    s1, b1 = _fold_bn(gamma1, beta1, mean1, var1, eps)
    s2, b2 = _fold_bn(gamma2, beta2, mean2, var2, eps)

    # Kernel packing: fold BN scales into conv weights (host side, free).
    w1 = w1_pt[:, :, 0, 0] * s1[:, None]                        # (Cinit, Cin)
    wdw = (dw_pt[:, 0] * s2[:, None, None]).reshape(
        new_channels, dw_size * dw_size)                        # (Cnew, K*K)
    kernel_params = (w1, b1[:, None], wdw, b2[:, None])
    torch_params = (w1_pt, dw_pt, (gamma1, beta1, mean1, var1),
                    (gamma2, beta2, mean2, var2))
    return kernel_params, torch_params


def ghost_module_reference(x, torch_params, oup, eps=1e-5):
    """Pure-JAX reference mirroring the PyTorch module (eval-mode BN)."""
    w1_pt, dw_pt, bn1, bn2 = torch_params
    g1, be1, m1, v1 = bn1
    g2, be2, m2, v2 = bn2
    init_channels = w1_pt.shape[0]

    dn = lax.conv_dimension_numbers(x.shape, w1_pt.shape,
                                    ('NCHW', 'OIHW', 'NCHW'))
    x1 = lax.conv_general_dilated(x, w1_pt, (1, 1), ((0, 0), (0, 0)),
                                  dimension_numbers=dn)
    x1 = (x1 - m1[None, :, None, None]) / jnp.sqrt(v1 + eps)[None, :, None, None]
    x1 = x1 * g1[None, :, None, None] + be1[None, :, None, None]
    x1 = jnp.maximum(x1, 0.0)

    dn2 = lax.conv_dimension_numbers(x1.shape, dw_pt.shape,
                                     ('NCHW', 'OIHW', 'NCHW'))
    x2 = lax.conv_general_dilated(x1, dw_pt, (1, 1), ((1, 1), (1, 1)),
                                  dimension_numbers=dn2,
                                  feature_group_count=init_channels)
    x2 = (x2 - m2[None, :, None, None]) / jnp.sqrt(v2 + eps)[None, :, None, None]
    x2 = x2 * g2[None, :, None, None] + be2[None, :, None, None]
    x2 = jnp.maximum(x2, 0.0)

    out = jnp.concatenate([x1, x2], axis=1)
    return out[:, :oup, :, :]


if __name__ == "__main__":
    N, inp, oup, H, W = 2, 4, 8, 16, 16
    key = jax.random.PRNGKey(0)
    kx, kp = jax.random.split(key)

    x = jax.random.normal(kx, (N, inp, H, W), jnp.float32)
    kernel_params, torch_params = make_params(kp, inp, oup)

    out = ghost_module_pallas(x, kernel_params, oup)
    out = jax.block_until_ready(out)

    ref = ghost_module_reference(x, torch_params, oup)
    assert out.shape == (N, oup, H, W), out.shape
    err = float(jnp.max(jnp.abs(out - ref)))
    assert err < 1e-4, err

    print("KERNEL_OK")
</pallas_src>

<mosaic_0001>
module attributes {stable_mosaic.version = 11 : i64} {
  func.func @_ghost_kernel(%arg0: i32, %arg1: memref<1x4x256xf32, #tpu.memory_space<vmem>>, %arg2: memref<4x4xf32, #tpu.memory_space<vmem>>, %arg3: memref<4x1xf32, #tpu.memory_space<vmem>>, %arg4: memref<4x9xf32, #tpu.memory_space<vmem>>, %arg5: memref<4x1xf32, #tpu.memory_space<vmem>>, %arg6: memref<1x8x256xf32, #tpu.memory_space<vmem>>) attributes {dimension_semantics = [#tpu.dimension_semantics<parallel>], iteration_bounds = array<i64: 2>, scalar_prefetch = 0 : i64, scratch_operands = 0 : i64, tpu.core_type = #tpu.core_type<tc>, window_params = [{transform_indices = @transform_0, window_bounds = array<i64: 1, 4, 256>}, {pipeline_mode = #tpu.pipeline_mode<synchronous>, transform_indices = @transform_1, window_bounds = array<i64: 4, 4>}, {pipeline_mode = #tpu.pipeline_mode<synchronous>, transform_indices = @transform_2, window_bounds = array<i64: 4, 1>}, {pipeline_mode = #tpu.pipeline_mode<synchronous>, transform_indices = @transform_3, window_bounds = array<i64: 4, 9>}, {pipeline_mode = #tpu.pipeline_mode<synchronous>, transform_indices = @transform_4, window_bounds = array<i64: 4, 1>}, {transform_indices = @transform_5, window_bounds = array<i64: 1, 8, 256>}]} {
    %c0 = arith.constant 0 : index
    %c0_0 = arith.constant 0 : index
    %c0_1 = arith.constant 0 : index
    %0 = vector.load %arg1[%c0, %c0_0, %c0_1] : memref<1x4x256xf32, #tpu.memory_space<vmem>>, vector<1x4x256xf32>
    %1 = vector.shape_cast %0 : vector<1x4x256xf32> to vector<4x256xf32>
    %c0_2 = arith.constant 0 : index
    %c0_3 = arith.constant 0 : index
    %2 = vector.load %arg2[%c0_2, %c0_3] : memref<4x4xf32, #tpu.memory_space<vmem>>, vector<4x4xf32>
    %c0_4 = arith.constant 0 : index
    %c0_5 = arith.constant 0 : index
    %3 = vector.load %arg3[%c0_4, %c0_5] : memref<4x1xf32, #tpu.memory_space<vmem>>, vector<4x1xf32>
    %c0_6 = arith.constant 0 : index
    %c0_7 = arith.constant 0 : index
    %4 = vector.load %arg4[%c0_6, %c0_7] : memref<4x9xf32, #tpu.memory_space<vmem>>, vector<4x9xf32>
    %c0_8 = arith.constant 0 : index
    %c0_9 = arith.constant 0 : index
    %5 = vector.load %arg5[%c0_8, %c0_9] : memref<4x1xf32, #tpu.memory_space<vmem>>, vector<4x1xf32>
    %cst = arith.constant 0.000000e+00 : f32
    %6 = vector.broadcast %cst : f32 to vector<4x256xf32>
    %7 = vector.extract_strided_slice %2 {offsets = [0, 0], sizes = [4, 1], strides = [1, 1]} : vector<4x4xf32> to vector<4x1xf32>
    %8 = vector.extract_strided_slice %1 {offsets = [0, 0], sizes = [1, 256], strides = [1, 1]} : vector<4x256xf32> to vector<1x256xf32>
    %9 = vector.broadcast %7 : vector<4x1xf32> to vector<4x256xf32>
    %10 = vector.broadcast %8 : vector<1x256xf32> to vector<4x256xf32>
    %11 = arith.mulf %9, %10 : vector<4x256xf32>
    %12 = arith.addf %6, %11 : vector<4x256xf32>
    %13 = vector.extract_strided_slice %2 {offsets = [0, 1], sizes = [4, 1], strides = [1, 1]} : vector<4x4xf32> to vector<4x1xf32>
    %14 = vector.extract_strided_slice %1 {offsets = [1, 0], sizes = [1, 256], strides = [1, 1]} : vector<4x256xf32> to vector<1x256xf32>
    %15 = vector.broadcast %13 : vector<4x1xf32> to vector<4x256xf32>
    %16 = vector.broadcast %14 : vector<1x256xf32> to vector<4x256xf32>
    %17 = arith.mulf %15, %16 : vector<4x256xf32>
    %18 = arith.addf %12, %17 : vector<4x256xf32>
    %19 = vector.extract_strided_slice %2 {offsets = [0, 2], sizes = [4, 1], strides = [1, 1]} : vector<4x4xf32> to vector<4x1xf32>
    %20 = vector.extract_strided_slice %1 {offsets = [2, 0], sizes = [1, 256], strides = [1, 1]} : vector<4x256xf32> to vector<1x256xf32>
    %21 = vector.broadcast %19 : vector<4x1xf32> to vector<4x256xf32>
    %22 = vector.broadcast %20 : vector<1x256xf32> to vector<4x256xf32>
    %23 = arith.mulf %21, %22 : vector<4x256xf32>
    %24 = arith.addf %18, %23 : vector<4x256xf32>
    %25 = vector.extract_strided_slice %2 {offsets = [0, 3], sizes = [4, 1], strides = [1, 1]} : vector<4x4xf32> to vector<4x1xf32>
    %26 = vector.extract_strided_slice %1 {offsets = [3, 0], sizes = [1, 256], strides = [1, 1]} : vector<4x256xf32> to vector<1x256xf32>
    %27 = vector.broadcast %25 : vector<4x1xf32> to vector<4x256xf32>
    %28 = vector.broadcast %26 : vector<1x256xf32> to vector<4x256xf32>
    %29 = arith.mulf %27, %28 : vector<4x256xf32>
    %30 = arith.addf %24, %29 : vector<4x256xf32>
    %31 = vector.broadcast %3 : vector<4x1xf32> to vector<4x256xf32>
    %32 = arith.addf %30, %31 : vector<4x256xf32>
    %cst_10 = arith.constant 0.000000e+00 : f32
    %33 = vector.broadcast %cst_10 : f32 to vector<4x256xf32>
    %34 = arith.maximumf %32, %33 : vector<4x256xf32>
    %35 = tpu.iota {dimensions = array<i32: 1>} : vector<1x256xi32>
    %c16_i32 = arith.constant 16 : i32
    %c0_i32 = arith.constant 0 : i32
    %36 = arith.cmpi eq, %c16_i32, %c0_i32 : i32
    %c1_i32 = arith.constant 1 : i32
    %37 = arith.select %36, %c1_i32, %c16_i32 : i32
    %38 = vector.broadcast %37 : i32 to vector<1x256xi32>
    %39 = arith.remsi %35, %38 : vector<1x256xi32>
    %c0_i32_11 = arith.constant 0 : i32
    %40 = vector.broadcast %c0_i32_11 : i32 to vector<1x256xi32>
    %41 = arith.cmpi ne, %39, %40 : vector<1x256xi32>
    %c0_i32_12 = arith.constant 0 : i32
    %42 = vector.broadcast %c0_i32_12 : i32 to vector<1x256xi32>
    %43 = arith.cmpi slt, %39, %42 : vector<1x256xi32>
    %c0_i32_13 = arith.constant 0 : i32
    %44 = arith.cmpi slt, %37, %c0_i32_13 : i32
    %45 = vector.broadcast %44 : i1 to vector<1x256xi1>
    %46 = vector.broadcast %45 : vector<1x256xi1> to vector<1x256xi1>
    %47 = arith.xori %43, %46 : vector<1x256xi1>
    %48 = arith.andi %47, %41 : vector<1x256xi1>
    %49 = vector.broadcast %37 : i32 to vector<1x256xi32>
    %50 = arith.addi %39, %49 : vector<1x256xi32>
    %51 = arith.select %48, %50, %39 : vector<1x256xi1>, vector<1x256xi32>
    %cst_14 = arith.constant 0.000000e+00 : f32
    %52 = vector.broadcast %cst_14 : f32 to vector<4x1xf32>
    %53 = vector.extract_strided_slice %34 {offsets = [0, 0], sizes = [4, 255], strides = [1, 1]} : vector<4x256xf32> to vector<4x255xf32>
    %54 = tpu.concatenate %52, %53 in 1 : vector<4x1xf32>, vector<4x255xf32> -> vector<4x256xf32>
    %c-1_i32 = arith.constant -1 : i32
    %55 = vector.broadcast %c-1_i32 : i32 to vector<1x256xi32>
    %56 = arith.addi %51, %55 : vector<1x256xi32>
    %c0_i32_15 = arith.constant 0 : i32
    %57 = vector.broadcast %c0_i32_15 : i32 to vector<1x256xi32>
    %58 = arith.cmpi sge, %56, %57 : vector<1x256xi32>
    %c-1_i32_16 = arith.constant -1 : i32
    %59 = vector.broadcast %c-1_i32_16 : i32 to vector<1x256xi32>
    %60 = arith.addi %51, %59 : vector<1x256xi32>
    %c16_i32_17 = arith.constant 16 : i32
    %61 = vector.broadcast %c16_i32_17 : i32 to vector<1x256xi32>
    %62 = arith.cmpi slt, %60, %61 : vector<1x256xi32>
    %63 = arith.andi %58, %62 : vector<1x256xi1>
    %cst_18 = arith.constant 0.000000e+00 : f32
    %64 = vector.shape_cast %63 : vector<1x256xi1> to vector<1x256xi1>
    %65 = vector.broadcast %64 : vector<1x256xi1> to vector<4x256xi1>
    %66 = vector.broadcast %cst_18 : f32 to vector<4x256xf32>
    %67 = arith.select %65, %54, %66 : vector<4x256xi1>, vector<4x256xf32>
    %cst_19 = arith.constant 0.000000e+00 : f32
    %68 = vector.broadcast %cst_19 : f32 to vector<4x1xf32>
    %69 = vector.extract_strided_slice %34 {offsets = [0, 1], sizes = [4, 255], strides = [1, 1]} : vector<4x256xf32> to vector<4x255xf32>
    %70 = tpu.concatenate %69, %68 in 1 : vector<4x255xf32>, vector<4x1xf32> -> vector<4x256xf32>
    %c1_i32_20 = arith.constant 1 : i32
    %71 = vector.broadcast %c1_i32_20 : i32 to vector<1x256xi32>
    %72 = arith.addi %51, %71 : vector<1x256xi32>
    %c0_i32_21 = arith.constant 0 : i32
    %73 = vector.broadcast %c0_i32_21 : i32 to vector<1x256xi32>
    %74 = arith.cmpi sge, %72, %73 : vector<1x256xi32>
    %c1_i32_22 = arith.constant 1 : i32
    %75 = vector.broadcast %c1_i32_22 : i32 to vector<1x256xi32>
    %76 = arith.addi %51, %75 : vector<1x256xi32>
    %c16_i32_23 = arith.constant 16 : i32
    %77 = vector.broadcast %c16_i32_23 : i32 to vector<1x256xi32>
    %78 = arith.cmpi slt, %76, %77 : vector<1x256xi32>
    %79 = arith.andi %74, %78 : vector<1x256xi1>
    %cst_24 = arith.constant 0.000000e+00 : f32
    %80 = vector.shape_cast %79 : vector<1x256xi1> to vector<1x256xi1>
    %81 = vector.broadcast %80 : vector<1x256xi1> to vector<4x256xi1>
    %82 = vector.broadcast %cst_24 : f32 to vector<4x256xf32>
    %83 = arith.select %81, %70, %82 : vector<4x256xi1>, vector<4x256xf32>
    %cst_25 = arith.constant 0.000000e+00 : f32
    %84 = vector.broadcast %cst_25 : f32 to vector<4x256xf32>
    %cst_26 = arith.constant 0.000000e+00 : f32
    %85 = vector.broadcast %cst_26 : f32 to vector<4x16xf32>
    %86 = vector.extract_strided_slice %67 {offsets = [0, 0], sizes = [4, 240], strides = [1, 1]} : vector<4x256xf32> to vector<4x240xf32>
    %87 = tpu.concatenate %85, %86 in 1 : vector<4x16xf32>, vector<4x240xf32> -> vector<4x256xf32>
    %88 = vector.extract_strided_slice %4 {offsets = [0, 0], sizes = [4, 1], strides = [1, 1]} : vector<4x9xf32> to vector<4x1xf32>
    %89 = vector.broadcast %88 : vector<4x1xf32> to vector<4x256xf32>
    %90 = arith.mulf %87, %89 : vector<4x256xf32>
    %91 = arith.addf %84, %90 : vector<4x256xf32>
    %cst_27 = arith.constant 0.000000e+00 : f32
    %92 = vector.broadcast %cst_27 : f32 to vector<4x16xf32>
    %93 = vector.extract_strided_slice %34 {offsets = [0, 0], sizes = [4, 240], strides = [1, 1]} : vector<4x256xf32> to vector<4x240xf32>
    %94 = tpu.concatenate %92, %93 in 1 : vector<4x16xf32>, vector<4x240xf32> -> vector<4x256xf32>
    %95 = vector.extract_strided_slice %4 {offsets = [0, 1], sizes = [4, 1], strides = [1, 1]} : vector<4x9xf32> to vector<4x1xf32>
    %96 = vector.broadcast %95 : vector<4x1xf32> to vector<4x256xf32>
    %97 = arith.mulf %94, %96 : vector<4x256xf32>
    %98 = arith.addf %91, %97 : vector<4x256xf32>
    %cst_28 = arith.constant 0.000000e+00 : f32
    %99 = vector.broadcast %cst_28 : f32 to vector<4x16xf32>
    %100 = vector.extract_strided_slice %83 {offsets = [0, 0], sizes = [4, 240], strides = [1, 1]} : vector<4x256xf32> to vector<4x240xf32>
    %101 = tpu.concatenate %99, %100 in 1 : vector<4x16xf32>, vector<4x240xf32> -> vector<4x256xf32>
    %102 = vector.extract_strided_slice %4 {offsets = [0, 2], sizes = [4, 1], strides = [1, 1]} : vector<4x9xf32> to vector<4x1xf32>
    %103 = vector.broadcast %102 : vector<4x1xf32> to vector<4x256xf32>
    %104 = arith.mulf %101, %103 : vector<4x256xf32>
    %105 = arith.addf %98, %104 : vector<4x256xf32>
    %106 = vector.extract_strided_slice %4 {offsets = [0, 3], sizes = [4, 1], strides = [1, 1]} : vector<4x9xf32> to vector<4x1xf32>
    %107 = vector.broadcast %106 : vector<4x1xf32> to vector<4x256xf32>
    %108 = arith.mulf %67, %107 : vector<4x256xf32>
    %109 = arith.addf %105, %108 : vector<4x256xf32>
    %110 = vector.extract_strided_slice %4 {offsets = [0, 4], sizes = [4, 1], strides = [1, 1]} : vector<4x9xf32> to vector<4x1xf32>
    %111 = vector.broadcast %110 : vector<4x1xf32> to vector<4x256xf32>
    %112 = arith.mulf %34, %111 : vector<4x256xf32>
    %113 = arith.addf %109, %112 : vector<4x256xf32>
    %114 = vector.extract_strided_slice %4 {offsets = [0, 5], sizes = [4, 1], strides = [1, 1]} : vector<4x9xf32> to vector<4x1xf32>
    %115 = vector.broadcast %114 : vector<4x1xf32> to vector<4x256xf32>
    %116 = arith.mulf %83, %115 : vector<4x256xf32>
    %117 = arith.addf %113, %116 : vector<4x256xf32>
    %cst_29 = arith.constant 0.000000e+00 : f32
    %118 = vector.broadcast %cst_29 : f32 to vector<4x16xf32>
    %119 = vector.extract_strided_slice %67 {offsets = [0, 16], sizes = [4, 240], strides = [1, 1]} : vector<4x256xf32> to vector<4x240xf32>
    %120 = tpu.concatenate %119, %118 in 1 : vector<4x240xf32>, vector<4x16xf32> -> vector<4x256xf32>
    %121 = vector.extract_strided_slice %4 {offsets = [0, 6], sizes = [4, 1], strides = [1, 1]} : vector<4x9xf32> to vector<4x1xf32>
    %122 = vector.broadcast %121 : vector<4x1xf32> to vector<4x256xf32>
    %123 = arith.mulf %120, %122 : vector<4x256xf32>
    %124 = arith.addf %117, %123 : vector<4x256xf32>
    %cst_30 = arith.constant 0.000000e+00 : f32
    %125 = vector.broadcast %cst_30 : f32 to vector<4x16xf32>
    %126 = vector.extract_strided_slice %34 {offsets = [0, 16], sizes = [4, 240], strides = [1, 1]} : vector<4x256xf32> to vector<4x240xf32>
    %127 = tpu.concatenate %126, %125 in 1 : vector<4x240xf32>, vector<4x16xf32> -> vector<4x256xf32>
    %128 = vector.extract_strided_slice %4 {offsets = [0, 7], sizes = [4, 1], strides = [1, 1]} : vector<4x9xf32> to vector<4x1xf32>
    %129 = vector.broadcast %128 : vector<4x1xf32> to vector<4x256xf32>
    %130 = arith.mulf %127, %129 : vector<4x256xf32>
    %131 = arith.addf %124, %130 : vector<4x256xf32>
    %cst_31 = arith.constant 0.000000e+00 : f32
    %132 = vector.broadcast %cst_31 : f32 to vector<4x16xf32>
    %133 = vector.extract_strided_slice %83 {offsets = [0, 16], sizes = [4, 240], strides = [1, 1]} : vector<4x256xf32> to vector<4x240xf32>
    %134 = tpu.concatenate %133, %132 in 1 : vector<4x240xf32>, vector<4x16xf32> -> vector<4x256xf32>
    %135 = vector.extract_strided_slice %4 {offsets = [0, 8], sizes = [4, 1], strides = [1, 1]} : vector<4x9xf32> to vector<4x1xf32>
    %136 = vector.broadcast %135 : vector<4x1xf32> to vector<4x256xf32>
    %137 = arith.mulf %134, %136 : vector<4x256xf32>
    %138 = arith.addf %131, %137 : vector<4x256xf32>
    %139 = vector.broadcast %5 : vector<4x1xf32> to vector<4x256xf32>
    %140 = arith.addf %138, %139 : vector<4x256xf32>
    %cst_32 = arith.constant 0.000000e+00 : f32
    %141 = vector.broadcast %cst_32 : f32 to vector<4x256xf32>
    %142 = arith.maximumf %140, %141 : vector<4x256xf32>
    %143 = tpu.concatenate %34, %142 in 0 : vector<4x256xf32>, vector<4x256xf32> -> vector<8x256xf32>
    %c0_33 = arith.constant 0 : index
    %c0_34 = arith.constant 0 : index
    %c0_35 = arith.constant 0 : index
    %144 = vector.load %arg6[%c0_33, %c0_34, %c0_35] : memref<1x8x256xf32, #tpu.memory_space<vmem>>, vector<1x8x256xf32>
    %145 = vector.shape_cast %144 : vector<1x8x256xf32> to vector<8x256xf32>
    %146 = vector.shape_cast %143 : vector<8x256xf32> to vector<1x8x256xf32>
    tpu.vector_store %arg6[%c0_33, %c0_34, %c0_35], %146 {strides = array<i32>} : memref<1x8x256xf32, #tpu.memory_space<vmem>>, vector<1x8x256xf32>,
    return
  }
  func.func @transform_0(%arg0: i32) -> (i32, i32, i32) {
    %c0_i32 = arith.constant 0 : i32
    %c0_i32_0 = arith.constant 0 : i32
    %c0_i32_1 = arith.constant 0 : i32
    return %arg0, %c0_i32, %c0_i32_0 : i32, i32, i32
  }
  func.func @transform_1(%arg0: i32) -> (i32, i32) {
    %c0_i32 = arith.constant 0 : i32
    %c0_i32_0 = arith.constant 0 : i32
    %c0_i32_1 = arith.constant 0 : i32
    return %c0_i32, %c0_i32_0 : i32, i32
  }
  func.func @transform_2(%arg0: i32) -> (i32, i32) {
    %c0_i32 = arith.constant 0 : i32
    %c0_i32_0 = arith.constant 0 : i32
    %c0_i32_1 = arith.constant 0 : i32
    return %c0_i32, %c0_i32_0 : i32, i32
  }
  func.func @transform_3(%arg0: i32) -> (i32, i32) {
    %c0_i32 = arith.constant 0 : i32
    %c0_i32_0 = arith.constant 0 : i32
    %c0_i32_1 = arith.constant 0 : i32
    return %c0_i32, %c0_i32_0 : i32, i32
  }
  func.func @transform_4(%arg0: i32) -> (i32, i32) {
    %c0_i32 = arith.constant 0 : i32
    %c0_i32_0 = arith.constant 0 : i32
    %c0_i32_1 = arith.constant 0 : i32
    return %c0_i32, %c0_i32_0 : i32, i32
  }
  func.func @transform_5(%arg0: i32) -> (i32, i32, i32) {
    %c0_i32 = arith.constant 0 : i32
    %c0_i32_0 = arith.constant 0 : i32
    %c0_i32_1 = arith.constant 0 : i32
    return %arg0, %c0_i32, %c0_i32_0 : i32, i32, i32
  }
}

</mosaic_0001>

<bundles_post_ra>
// kernel: tpu_custom_call.1
= control target key start
LH: loop header
LB: loop body
LE: loop exit
PB: predicated region body
PF: predicated region fallthrough
CT: control target
= control target key end

     0   :  { %10 = vsyncpa [#allocation3], 0  ;;  %s1113_s0 = inlined_call_operand.hbm [shape: f32[2,4,256], index: 0, kind: input, shape index: {}]   ;;  %s1114_s1 = inlined_call_operand.vmem [shape: f32[4,4], index: 1, kind: input, shape index: {}]   ;;  %s1115_s2 = inlined_call_operand.vmem [shape: f32[4,1], index: 2, kind: input, shape index: {}]   ;;  %s1116_s3 = inlined_call_operand.vmem [shape: f32[4,9], index: 3, kind: input, shape index: {}]   ;;  %s1117_s4 = inlined_call_operand.vmem [shape: f32[4,1], index: 4, kind: input, shape index: {}]   ;;  %s1118_s5 = inlined_call_operand.hbm [shape: f32[2,8,256], index: 5, kind: output, shape index: {}]  }
   0x1   :  { %12 = vsyncpa [#allocation3 + $0x1], 0 }
   0x2   :  { %13 = vsyncpa [#allocation4], 0 }
   0x3   :  { %15 = vsyncpa [#allocation4 + $0x1], 0  ;;  %s897_s18 = smov 0   ;;  %s899_s19 = smov 0  }
   0x4   :  { %s901_s20 = smov 0   ;;  %s903_s21 = smov 0  }
   0x5 LB: > { %s918_s22 = sadd.s32 4294967295, %s850_s21   ;;  %s668_s23 = sadd.s32 4294967294, %s850_s21   ;;  %s850_s21 = sphi %s903_s21, %s1135_s21   ;;  %s846_s20 = sphi %s901_s20, %s1134_s20   ;;  %s842_s19 = sphi %s899_s19, %s1133_s19   ;;  %s838_s18 = sphi %s897_s18, %s1132_s18  }
   0x6   : > { %s922_s24 = sadd.s32 1, %s850_s21   ;;  %s28_s25 = sadd.s32 1, %s846_s20 }
   0x7   : > { %s25_s26 = ssub.s32 %s850_s21, %s922_s24  ;;  %p35_p0 = scmp.ne.s32.totalorder %s846_s20, %s842_s19 }
   0x8   : > { %p26_p1 = scmp.eq.s32.totalorder %s25_s26, 0  ;;  %p36_p2 = scmp.eq.s32.totalorder %s850_s21, 0 }
   0x9   : > { %p41_p3 = scmp.ne.s32.totalorder %s842_s19, %s838_s18  ;;  %p42_p4 = scmp.eq.s32.totalorder %s918_s22, 0 }
   0xa   : > { %s934_s27 = scalar_select %p26_p1, %s846_s20, %s28_s25  }
   0xb   : > { %p936_p5 = por %p36_p2, %p35_p0  ;;  %p940_p6 = por %p42_p4, %p41_p3 }
   0xc   : > { %p149_p7 = scmp.eq.s32.totalorder %s918_s22, 1  ;;  %p155_p8 = scmp.eq.s32.totalorder %s668_s23, 1 }
   0xd   : > { %s1122_s29 = scalar_select %p940_p6, 1, 0 }
   0xe   : > { %p696_p10 = scmp.lt.s32.totalorder %s850_s21, 2  ;;  %p947_p11 = por %p149_p7, %p35_p0 }
   0xf   : > { %p951_p12 = por %p155_p8, %p41_p3  ;;  %s187_s7 = sand.u32 1, %s846_s20  }
  0x10   : > { %s1123_s30 = scalar_select %p947_p11, 1, 0 }
  0x11   : > { %s1124_s6 = scalar_select %p951_p12, 1, 0 }
  0x12   : > { %s682_s8 = sshll.u32 %s850_s21, 7  ;;  %s671_s9 = sshll.u32 %s187_s7, 3 }
  0x13   : > { %s960_s12 = scalar_lea.hbm %s1113_s0, %s682_s8  ;;  %s191_s13 = scalar_lea.vmem [#allocation2], %s671_s9 }
  0x14   : > { %s199_s14 = sshll.u32 %s191_s13, 4  ;;  %p964_p13 = pnand %p696_p10, %p936_p5  ;;  %s968_s14 = int_to_ptr.vmem [resolvable:$true] %s199_s14 }
  0x15   : > { %s188_s16 = scalar_lea.sflag [#allocation3], %s187_s7  ;;  %s758_s17 = scalar_lea.hbm %s960_s12, 128 }
  0x16   : > { %p759_p2 = scmp.ne.s32.totalorder %s960_s12, %s758_s17  ;;  %p760_p3 = pneg %p964_p13 }
  0x17   : > { %s763_s26 = scalar_lea.hbm %s1113_s0, 256  ;;  %p764_p5 = scmp.lt.s32.totalorder %s960_s12, %s1113_s0 }
  0x18   : > { %p761_p4 = pnand %p760_p3, %p759_p2  ;;  %p765_p8 = scmp.lt.s32.totalorder %s763_s26, %s758_s17 }
  0x1a   : > { %p762_p7 = pneg %p761_p4  ;;  %p766_p10 = por %p765_p8, %p764_p5 }
  0x1c   : > { %p767_p9 = pnand %p766_p10, %p762_p7 }
  0x1e   : > { %770 = shalt.err (!%p767_p9)
}
  0x1f   : > { %s771_s7 = scalar_lea.vmem %s968_s14, 128  ;;  %s852_s9 = smov [#allocation2]  }
  0x20   : > { %p772_p0 = scmp.ne.s32.totalorder %s968_s14, %s771_s7  ;;  %s776_s10 = sshll.u32 %s852_s9, 4  ;;  %s777_s10 = int_to_ptr.vmem [resolvable:$false] %s776_s10 }
  0x21   : > { %s778_s11 = scalar_lea.vmem %s777_s10, 256  ;;  %p779_p4 = scmp.lt.s32.totalorder %s968_s14, %s777_s10 }
  0x22   : > { %p774_p1 = pnand %p772_p0, %p760_p3  ;;  %p780_p12 = scmp.lt.s32.totalorder %s778_s11, %s771_s7 }
  0x24   : > { %p775_p2 = pneg %p774_p1  ;;  %p781_p11 = por %p780_p12, %p779_p4 }
  0x26   : > { %p782_p6 = pnand %p781_p11, %p775_p2 }
  0x28   : > { %785 = shalt.err (!%p782_p6)
}
  0x29   : > { %691 = dma.hbm_to_vmem [thread:$0]  (!%p964_p13), %s960_s12, 128, %s968_s14, %s188_s16  }
  0x2a   : > { %p1126_p9 = scmp.lt.s32.totalorder %s850_s21, 3  ;;  %p1127_p7 = scmp.ge.s32.totalorder %s850_s21, 1 }
  0x2c   : > { %p205_p0 = pnand %p1127_p7, %p1126_p9 }
  0x2d   : > { %s995_s13 = sand.u32 (!%p205_p0), 1, %s842_s19   ;;  %p1128_p6 = scmp.ne.s32.totalorder (!%p205_p0), %s1122_s29, 0 }
  0x2e   : > { %208 = sbr.rel (%p205_p0) target bundleno = 472 (0x1d8), region = 40  ;;  %s675_s17 = sshll.u32 (!%p205_p0), %s995_s13, 3 }
  0x2f   : > { %s211_s23 = scalar_lea.sflag (!%p205_p0), [#allocation3], %s995_s13  ;;  %s214_s25 = scalar_lea.vmem (!%p205_p0), [#allocation2], %s675_s17 }
  0x33   : > { %829 = dma.done.wait (%p1128_p6), %s211_s23, 128  }
  0x34   : > { %831 = vsyncadd (%p1128_p6), %s211_s23, 4294967168  ;;  %v853_v0 = vmov 0   ;;  %v854_v1 = vmov 2   ;;  %v242_v2 = vld [vmem:[%s1114_s1] sm:$0xf]  ;;  %v855_v3 = vmov 1   ;;  %v252_v6 = vlaneseq }
  0x35   : > { %743 = vset.pattern.permute.xlu0 %v853_v0  ;;  %745 = vset.pattern.permute.xlu1 %v854_v1  ;;  %v856_v4 = vmov 3   ;;  %v243_v5 = vld [vmem:[%s1115_s2] sm:$0xf]  ;;  %s857_s16 = smov 1   ;;  %s858_s26 = smov 127   ;;  %v859_v57 = vmov 5  }
  0x36   : > { %248 = vperm.xlu0 %743, %v242_v2   ;;  %301 = vperm.xlu1 %745, %v242_v2   ;;  %v253_v7 = vshrl.u32 %v252_v6, 7  ;;  %v241_v12 = vld [vmem:[%s214_s25] sm:$0xff]  ;;  %v860_v58 = vmov 4   ;;  %v861_v59 = vmov 6   ;;  %v862_v60 = vmov 7   ;;  %s863_s7 = smov 16  }
  0x37   : > { %v244_v56 = vld [vmem:[%s1116_s3] sm:$0xf]  ;;  %v864_v61 = vmov 8   ;;  %s865_s9 = smov 112   ;;  %v362_v62 = vand.u32 127, %v252_v6  ;;  %vm394_vm0 = vcmask 7168  }
  0x38   : > { %v254_v8 = vsub.s32 0, %v253_v7  ;;  %v258_v9 = vsub.s32 4, %v253_v7  ;;  %v280_v10 = vsub.s32 1, %v253_v7  ;;  %v284_v11 = vsub.s32 5, %v253_v7  ;;  %s676_s17 = sshll.u32 %s995_s13, 4  ;;  %s683_s23 = sshll.u32 %s918_s22, 8 }
  0x39   : > { %v306_v13 = vsub.s32 2, %v253_v7  ;;  %v310_v14 = vsub.s32 6, %v253_v7  ;;  %v332_v15 = vsub.s32 3, %v253_v7  ;;  %v336_v16 = vsub.s32 7, %v253_v7  ;;  %s240_s25 = scalar_lea.vmem [#allocation5], %s676_s17  ;;  %s1068_s15 = scalar_lea.hbm %s1118_s5, %s683_s23 }
  0x3a   : > { %744 = vset.pattern.permute.xlu0 %v855_v3  ;;  %746 = vset.pattern.permute.xlu1 %v856_v4  ;;  %v255_v17 = vrot.slane %v241_v12, %v254_v8  ;;  %v259_v18 = vrot.slane %v241_v12, %v258_v9  ;;  %v281_v19 = vrot.slane %v241_v12, %v280_v10  ;;  %v363_v63 = vadd.s32 128, %v362_v62  ;;  %s598_s12 = sshll.u32 %s240_s25, 4  ;;  %s584_s22 = scalar_lea.sflag [#allocation4], %s995_s13  ;;  %s1070_s12 = int_to_ptr.vmem [resolvable:$true] %s598_s12 }
  0x3b   : > { %275 = vperm.xlu0 %744, %v242_v2   ;;  %327 = vperm.xlu1 %746, %v242_v2   ;;  %v285_v20 = vrot.slane %v241_v12, %v284_v11  ;;  %v307_v21 = vrot.slane %v241_v12, %v306_v13  ;;  %v311_v22 = vrot.slane %v241_v12, %v310_v14  ;;  %vm417_vm3 = vcmask 1039360   ;;  %p1129_p12 = scmp.ne.s32.totalorder %s1123_s30, 0 }
  0x3c   : > { %v333_v25 = vrot.slane %v241_v12, %v332_v15  ;;  %v337_v26 = vrot.slane %v241_v12, %v336_v16  ;;  %v265_v27 = vrot.slane %v255_v17, %v254_v8  ;;  %v269_v28 = vrot.slane %v259_v18, %v254_v8 }
  0x3d   : > { %v291_v29 = vrot.slane %v281_v19, %v280_v10  ;;  %v295_v30 = vrot.slane %v285_v20, %v280_v10  ;;  %v317_v31 = vrot.slane %v307_v21, %v306_v13  ;;  %v321_v32 = vrot.slane %v311_v22, %v306_v13  ;;  %v245_v19 = vld [vmem:[%s1117_s4] sm:$0xf] }
  0x3e   : > { %v343_v33 = vrot.slane %v333_v25, %v332_v15  ;;  %v347_v34 = vrot.slane %v337_v26, %v332_v15  ;;  %v375_v2 = vand.u32 15, %v363_v63  ;;  %vm442_vm6 = vcmask 130048  }
  0x3f   : > { %747 = vset.pattern.permute.xlu1 %v853_v0  ;;  %748 = vset.pattern.permute.xlu0 %v853_v0  ;;  %vm518_vm7 = vcmask 916480   ;;  %vm578_vm8 = vcmask 1043456  }
  0x40   : > { %354 = vperm.xlu1 %747, %v243_v5   ;;  %v423_v6 = vadd.s32 1, %v375_v2 }
  0x42   : > { %vm427_vm5 = vcmp.lt.s32.totalorder %v423_v6, 16 }
  0x44   : > { %749 = vset.pattern.permute.xlu1 %v855_v3 }
  0xb1   : > { %v249_v23 = vpop.permute.xlu0 %248  ;;  %v302_v24 = vpop.permute.xlu1 %301 }
  0xb2   : > { %v270_v37 = vmul.f32 %v265_v27, %v249_v23  ;;  %v271_v38 = vmul.f32 %v269_v28, %v249_v23  ;;  %v322_v41 = vmul.f32 %v317_v31, %v302_v24  ;;  %v323_v42 = vmul.f32 %v321_v32, %v302_v24 }
  0xb6   : > { %v276_v35 = vpop.permute.xlu0 %275  ;;  %v328_v36 = vpop.permute.xlu1 %327 }
  0xb7   : > { %v296_v39 = vmul.f32 %v291_v29, %v276_v35  ;;  %v297_v40 = vmul.f32 %v295_v30, %v276_v35  ;;  %v348_v45 = vmul.f32 %v343_v33, %v328_v36  ;;  %v349_v46 = vmul.f32 %v347_v34, %v328_v36 }
  0xb9   : > { %v298_v43 = vadd.f32 %v296_v39, %v270_v37  ;;  %v299_v44 = vadd.f32 %v297_v40, %v271_v38 }
  0xbb   : > { %v324_v47 = vadd.f32 %v322_v41, %v298_v43  ;;  %v325_v48 = vadd.f32 %v323_v42, %v299_v44  ;;  %v355_v49 = vpop.permute.xlu1 %354 }
  0xbd   : > { %v350_v50 = vadd.f32 %v348_v45, %v324_v47  ;;  %v351_v51 = vadd.f32 %v349_v46, %v325_v48 }
  0xbf   : > { %v357_v52 = vadd.f32 %v355_v49, %v350_v50  ;;  %v358_v53 = vadd.f32 %v355_v49, %v351_v51 }
  0xc1   : > { %v1015_v54 = vmax.f32 %v357_v52, 0.0  ;;  %v1017_v55 = vmax.f32 %v358_v53, 0.0 }
  0xc3   : > { %392 = vrot.lane.b32.xlu1 %v1017_v55, %s857_s16  ;;  %390 = vrot.lane.b32.xlu0 %v1015_v54, %s857_s16  ;;  %s786_s16 = scalar_lea.vmem %s1070_s12, 256 }
  0xc4   : > { %p787_p11 = scmp.ne.s32.totalorder %s1070_s12, %s786_s16 }
  0xc6   : > { %p788_p13 = pnand %p787_p11, %p1129_p12 }
  0xc7   : > { %415 = vrot.lane.b32.xlu1 %v1017_v55, %s858_s26  ;;  %413 = vrot.lane.b32.xlu0 %v1015_v54, %s858_s26  ;;  %s866_s26 = smov [#allocation5]  }
  0xc8   : > { %p789_p1 = pneg %p788_p13  ;;  %s790_s28 = sshll.u32 %s866_s26, 4  ;;  %s791_s28 = int_to_ptr.vmem [resolvable:$false] %s790_s28 }
  0xc9   : > { %s792_s8 = scalar_lea.vmem %s791_s28, 512  ;;  %p793_p3 = scmp.lt.s32.totalorder %s1070_s12, %s791_s28 }
  0xca   : > { %p794_p5 = scmp.lt.s32.totalorder %s792_s8, %s786_s16 }
  0xcb   : > { %465 = vperm.xlu1 %749, %v244_v56   ;;  %449 = vperm.xlu0 %748, %v244_v56  }
  0xcc   : > { %p795_p8 = por %p794_p5, %p793_p3 }
  0xce   : > { %p796_p10 = pnand %p795_p8, %p789_p1 }
  0xcf   : > { %750 = vset.pattern.permute.xlu1 %v854_v1  ;;  %751 = vset.pattern.permute.xlu0 %v856_v4  ;;  %v368_v1 = vand.u32 15, %v362_v62  ;;  %v400_v4 = vadd.s32 4294967295, %v375_v2 }
  0xd0   : > { %483 = vperm.xlu1 %750, %v244_v56   ;;  %491 = vperm.xlu0 %751, %v244_v56  }
  0xd1   : > { %v399_v3 = vadd.s32 4294967295, %v368_v1  ;;  %vm402_vm2 = vcmp.ge.s32.totalorder %v400_v4, 0  ;;  %v422_v5 = vadd.s32 1, %v368_v1 }
  0xd3   : > { %vm401_vm1 = vcmp.ge.s32.totalorder %v399_v3, 0  ;;  %vm426_vm4 = vcmp.lt.s32.totalorder %v422_v5, 16 }
  0xd4   : > { %753 = vset.pattern.permute.xlu1 %v859_v57  ;;  %752 = vset.pattern.permute.xlu0 %v860_v58 }
  0xd5   : > { %507 = vperm.xlu1 %753, %v244_v56   ;;  %499 = vperm.xlu0 %752, %v244_v56  }
  0xd9   : > { %754 = vset.pattern.permute.xlu1 %v861_v59  ;;  %755 = vset.pattern.permute.xlu0 %v862_v60 }
  0xda   : > { %524 = vperm.xlu1 %754, %v244_v56   ;;  %540 = vperm.xlu0 %755, %v244_v56  }
  0xde   : > { %458 = vrot.lane.b32.xlu1 %v1017_v55, %s863_s7  ;;  %456 = vrot.lane.b32.xlu0 %v1015_v54, %s863_s7 }
  0xdf   : > { %756 = vset.pattern.permute.xlu0 %v864_v61 }
  0xe2   : > { %531 = vrot.lane.b32.xlu1 %v1015_v54, %s865_s9 }
  0xe6   : > { %533 = vrot.lane.b32.xlu1 %v1017_v55, %s865_s9 }
 0x135   : > { %v393_v7 = vpop.permute.xlu1 %392  ;;  %v391_v8 = vpop.permute.xlu0 %390 }
 0x136   : > { %v395_v9 = vsel %vm394_vm0, %v391_v8, %v393_v7  ;;  %v398_v10 = vsel %vm394_vm0, 0.0, %v391_v8 }
 0x137   : > { %v411_v11 = vsel %vm401_vm1, %v398_v10, 0.0  ;;  %v412_v12 = vsel %vm402_vm2, %v395_v9, 0.0 }
 0x138   : > { %438 = vrot.lane.b32.xlu0 %v411_v11, %s863_s7  ;;  %440 = vrot.lane.b32.xlu1 %v412_v12, %s863_s7 }
 0x139   : > { %v416_v13 = vpop.permute.xlu1 %415  ;;  %v414_v14 = vpop.permute.xlu0 %413 }
 0x13a   : > { %v418_v15 = vsel %vm417_vm3, %v414_v14, %v416_v13  ;;  %v421_v17 = vsel %vm417_vm3, %v416_v13, 0.0 }
 0x13b   : > { %v434_v16 = vsel %vm426_vm4, %v418_v15, 0.0  ;;  %v435_v18 = vsel %vm427_vm5, %v421_v17, 0.0 }
 0x13c   : > { %556 = vperm.xlu0 %756, %v244_v56   ;;  %474 = vrot.lane.b32.xlu1 %v434_v16, %s863_s7 }
 0x140   : > { %547 = vrot.lane.b32.xlu0 %v434_v16, %s865_s9  ;;  %476 = vrot.lane.b32.xlu1 %v435_v18, %s863_s7 }
 0x141   : > { %757 = vset.pattern.permute.xlu0 %v853_v0 }
 0x144   : > { %514 = vrot.lane.b32.xlu1 %v411_v11, %s865_s9  ;;  %565 = vperm.xlu0 %757, %v245_v19  }
 0x146   : > { %v466_v20 = vpop.permute.xlu1 %465  ;;  %v450_v22 = vpop.permute.xlu0 %449 }
 0x148   : > { %516 = vrot.lane.b32.xlu1 %v412_v12, %s865_s9 }
 0x14b   : > { %v484_v21 = vpop.permute.xlu1 %483  ;;  %v492_v24 = vpop.permute.xlu0 %491 }
 0x14c   : > { %549 = vrot.lane.b32.xlu1 %v435_v18, %s865_s9  ;;  %v494_v44 = vmul.f32 %v492_v24, %v411_v11  ;;  %v495_v53 = vmul.f32 %v492_v24, %v412_v12 }
 0x150   : > { %v508_v23 = vpop.permute.xlu1 %507  ;;  %v500_v26 = vpop.permute.xlu0 %499 }
 0x151   : > { %v502_v49 = vmul.f32 %v500_v26, %v1015_v54  ;;  %v510_v56 = vmul.f32 %v508_v23, %v434_v16  ;;  %v503_v61 = vmul.f32 %v500_v26, %v1017_v55  ;;  %v511_v1 = vmul.f32 %v508_v23, %v435_v18 }
 0x155   : > { %v525_v25 = vpop.permute.xlu1 %524  ;;  %v541_v0 = vpop.permute.xlu0 %540 }
 0x159   : > { %v459_v27 = vpop.permute.xlu1 %458  ;;  %v457_v29 = vpop.permute.xlu0 %456 }
 0x15a   : > { %v463_v33 = vsel %vm442_vm6, 0.0, %v457_v29  ;;  %v460_v39 = vsel %vm442_vm6, %v457_v29, %v459_v27 }
 0x15b   : > { %v468_v37 = vmul.f32 %v466_v20, %v463_v33  ;;  %v469_v45 = vmul.f32 %v466_v20, %v460_v39 }
 0x15d   : > { %v532_v28 = vpop.permute.xlu1 %531 }
 0x161   : > { %v534_v30 = vpop.permute.xlu1 %533 }
 0x162   : > { %v535_v4 = vsel %vm518_vm7, %v532_v28, %v534_v30  ;;  %v538_v5 = vsel %vm518_vm7, %v534_v30, 0.0 }
 0x163   : > { %v543_v6 = vmul.f32 %v541_v0, %v535_v4  ;;  %v544_v13 = vmul.f32 %v541_v0, %v538_v5 }
 0x1aa   : > { %v441_v31 = vpop.permute.xlu1 %440  ;;  %v439_v32 = vpop.permute.xlu0 %438 }
 0x1ab   : > { %v446_v34 = vsel %vm442_vm6, 0.0, %v439_v32  ;;  %v443_v36 = vsel %vm442_vm6, %v439_v32, %v441_v31 }
 0x1ac   : > { %v452_v35 = vmul.f32 %v450_v22, %v446_v34  ;;  %v453_v41 = vmul.f32 %v450_v22, %v443_v36 }
 0x1ae   : > { %v475_v38 = vpop.permute.xlu1 %474  ;;  %v470_v42 = vadd.f32 %v468_v37, %v452_v35  ;;  %v471_v50 = vadd.f32 %v469_v45, %v453_v41 }
 0x1af   : > { %v481_v40 = vsel %vm442_vm6, 0.0, %v475_v38 }
 0x1b0   : > { %v486_v43 = vmul.f32 %v484_v21, %v481_v40 }
 0x1b2   : > { %v488_v46 = vadd.f32 %v486_v43, %v470_v42  ;;  %v477_v47 = vpop.permute.xlu1 %476 }
 0x1b3   : > { %v478_v48 = vsel %vm442_vm6, %v475_v38, %v477_v47 }
 0x1b4   : > { %v496_v51 = vadd.f32 %v494_v44, %v488_v46  ;;  %v487_v52 = vmul.f32 %v484_v21, %v478_v48 }
 0x1b6   : > { %v489_v57 = vadd.f32 %v487_v52, %v471_v50  ;;  %v515_v58 = vpop.permute.xlu1 %514  ;;  %v504_v59 = vadd.f32 %v502_v49, %v496_v51 }
 0x1b7   : > { %v557_v60 = vpop.permute.xlu0 %556 }
 0x1b8   : > { %v497_v62 = vadd.f32 %v495_v53, %v489_v57  ;;  %v512_v63 = vadd.f32 %v510_v56, %v504_v59 }
 0x1ba   : > { %v517_v2 = vpop.permute.xlu1 %516  ;;  %v505_v3 = vadd.f32 %v503_v61, %v497_v62 }
 0x1bb   : > { %v519_v7 = vsel %vm518_vm7, %v515_v58, %v517_v2  ;;  %v522_v8 = vsel %vm518_vm7, %v517_v2, 0.0  ;;  %v548_v12 = vpop.permute.xlu0 %547 }
 0x1bc   : > { %v513_v9 = vadd.f32 %v511_v1, %v505_v3  ;;  %v527_v10 = vmul.f32 %v525_v25, %v519_v7  ;;  %v528_v11 = vmul.f32 %v525_v25, %v522_v8 }
 0x1be   : > { %v529_v14 = vadd.f32 %v527_v10, %v512_v63  ;;  %v530_v15 = vadd.f32 %v528_v11, %v513_v9  ;;  %v550_v16 = vpop.permute.xlu1 %549 }
 0x1bf   : > { %v551_v17 = vsel %vm518_vm7, %v548_v12, %v550_v16  ;;  %v554_v18 = vsel %vm518_vm7, %v550_v16, 0.0  ;;  %v566_v23 = vpop.permute.xlu0 %565 }
 0x1c0   : > { %v559_v19 = vmul.f32 %v557_v60, %v551_v17  ;;  %v560_v20 = vmul.f32 %v557_v60, %v554_v18  ;;  %v545_v21 = vadd.f32 %v543_v6, %v529_v14  ;;  %v546_v22 = vadd.f32 %v544_v13, %v530_v15 }
 0x1c2   : > { %v561_v24 = vadd.f32 %v559_v19, %v545_v21  ;;  %v562_v26 = vadd.f32 %v560_v20, %v546_v22 }
 0x1c4   : > { %v568_v25 = vadd.f32 %v566_v23, %v561_v24  ;;  %v569_v27 = vadd.f32 %v566_v23, %v562_v26 }
 0x1c6   : > { %v570_v0 = vmax.f32 %v568_v25, 0.0  ;;  %v571_v28 = vmax.f32 %v569_v27, 0.0 }
 0x1c8   : > { %v574_v29 = vrot.slane %v570_v0, 4  ;;  %v575_v30 = vrot.slane %v571_v28, 4 }
 0x1ca   : > { %v579_v31 = vsel %vm578_vm8, %v1015_v54, %v574_v29  ;;  %v580_v32 = vsel %vm578_vm8, %v1017_v55, %v575_v30 }
 0x1cb   : > { %581 = vst [vmem:[%s240_s25] sm:$0xff] %v579_v31  ;;  %582 = vst [vmem:[%s240_s25 + $0x8] sm:$0xff] %v580_v32 }
 0x1cc   : > { %799 = shalt.err (!%p796_p10)
}
 0x1cd   : > { %s800_s7 = scalar_lea.hbm %s1068_s15, 256  ;;  %s804_s10 = scalar_lea.hbm %s1118_s5, 512 }
 0x1ce   : > { %p801_p2 = scmp.ne.s32.totalorder %s1068_s15, %s800_s7  ;;  %p805_p7 = scmp.lt.s32.totalorder %s1068_s15, %s1118_s5 }
 0x1cf   : > { %p806_p0 = scmp.lt.s32.totalorder %s804_s10, %s800_s7 }
 0x1d0   : > { %p802_p4 = pnand %p801_p2, %p1129_p12 }
 0x1d1   : > { %p807_p6 = por %p806_p0, %p805_p7 }
 0x1d2   : > { %p803_p9 = pneg %p802_p4 }
 0x1d4   : > { %p808_p11 = pnand %p807_p6, %p803_p9 }
 0x1d6   : > { %811 = shalt.err (!%p808_p11)
}
 0x1d7   : > { %686 = dma.vmem_to_hbm [thread:$0]  (%p1129_p12), %s1070_s12, 256, %s1068_s15, %s584_s22  }
 0x1d8 PF: > { %s610_s23 = sand.u32 1, %s838_s18   ;;  %p1130_p13 = scmp.ne.s32.totalorder %s1124_s6, 0 }
 0x1d9   : > { %p1131_p1 = scmp.ge.s32.totalorder %s850_s21, 2  ;;  %s611_s25 = scalar_lea.sflag [#allocation4], %s610_s23 }
 0x1db   : > { %p693_p3 = pnand %p1131_p1, %p1130_p13 }
 0x1dd   : > { %p694_p5 = pneg %p693_p3 }
 0x1df   : > { %833 = dma.done.wait (%p694_p5), %s611_s25, 256  }
 0x1e0   : > { %835 = vsyncadd (%p694_p5), %s611_s25, 4294967040  ;;  %p18_p8 = scmp.ge.s32.totalorder %s922_s24, 4   ;;  %s1132_s18 = smov %s842_s19 }
 0x1e1   : > { %s1133_s19 = smov %s846_s20  ;;  %s1134_s20 = smov %s934_s27 }
 0x1e2   : > { %s1135_s21 = smov %s922_s24  ;;  %20 = sbr.rel (!%p18_p8) target bundleno = 5 (0x5), region = 85 }
 0x1e7   :  { %616 = vsyncpa [#allocation3], 1 }
 0x1e8   :  { %618 = vsyncpa [#allocation3 + $0x1], 1 }
 0x1e9   :  { %619 = vsyncpa [#allocation4], 1 }
 0x1ea   :  { %621 = vsyncpa [#allocation4 + $0x1], 1 }

</bundles_post_ra>
